<compile_context>
chip_gen: v6e
topology: v6e:2x2x1
jax: 0.10.0
libtpu: 0.0.40
codegen_flags: <defaults>
</compile_context>

<pallas_src>
import functools

import jax
import jax.numpy as jnp
from jax.experimental import pallas as pl
from jax.experimental.pallas import tpu as pltpu

C_F = 256
D_POA, D_MOA, D_ASP, D_DEV = 6, 5, 2, 2
D_TOTAL = D_POA + D_MOA + D_ASP + D_DEV   # 15
D_INIT = 21
HIDDEN = 256

ATTR_PAD = 128                 # lane-dense width of each packed output half
N_FUSED = ATTR_PAD + HIDDEN    # 384 = fused N dim of the first matmul
TILE_B_MAX = 1024              # budgeted for v7x 64 MiB VMEM / 32 MiB scoped default


def _round_up(x, m):
    return ((x + m - 1) // m) * m


def _init_adjacency_matrix():
    """Same adjacency construction as the PyTorch module."""
    A = jnp.zeros((D_TOTAL, D_TOTAL), dtype=jnp.float32)
    A = A.at[:D_POA, D_POA:D_POA + D_MOA].set(1.0)
    A = A.at[D_POA:D_POA + D_MOA, -D_DEV:].set(1.0)
    A = A + A.T
    A = A + jnp.eye(D_TOTAL, dtype=jnp.float32)
    return A


def _aai_kernel(z_ref, wf_ref, b1_ref, w2_ref, b2_ref, out_ref):
    z = z_ref[...]                                            # [TILE_B, 256]

    # Single lane-dense MXU pass: attr head + MLP layer 1 fused (N = 384).
    y = jnp.dot(z, wf_ref[...],
                preferred_element_type=jnp.float32)           # [TILE_B, 384] f32

    attr = y[:, :ATTR_PAD]                                    # [TILE_B, 128]
    h = jnp.maximum(y[:, ATTR_PAD:] + b1_ref[...], 0.0)       # [TILE_B, 256] f32

    # MLP layer 2, N padded to a full 128-lane width.
    init = jnp.dot(h.astype(w2_ref.dtype), w2_ref[...],
                   preferred_element_type=jnp.float32) + b2_ref[...]

    # Lane-aligned (multiples of 128) full-width stores into the packed output.
    out_ref[:, :ATTR_PAD] = attr.astype(out_ref.dtype)
    out_ref[:, ATTR_PAD:] = init.astype(out_ref.dtype)


@functools.partial(jax.jit, static_argnames=("compute_dtype",))
def aai_forward(z, W, A, W1, b1, W2, b2, compute_dtype=jnp.bfloat16):
    B = z.shape[0]
    b1 = jnp.asarray(b1, jnp.float32).reshape(1, HIDDEN)
    b2 = jnp.asarray(b2, jnp.float32).reshape(1, D_INIT)

    # --- Hoisted, batch-invariant weight transform (done once, not per tile) ---
    W_hat = jnp.maximum(W.astype(jnp.float32) @ A.astype(jnp.float32), 0.0)  # [256, 15]

    # Lane-dense packed weights; padded columns are ZERO so padded logit lanes
    # are exactly zero and are sliced away below.
    W_hat_pad = jnp.zeros((C_F, ATTR_PAD), jnp.float32).at[:, :D_TOTAL].set(W_hat)
    W_fused = jnp.concatenate(
        [W_hat_pad, W1.astype(jnp.float32)], axis=1).astype(compute_dtype)   # [256, 384]
    W2_pad = jnp.zeros((HIDDEN, ATTR_PAD), jnp.float32
                       ).at[:, :D_INIT].set(W2.astype(jnp.float32)).astype(compute_dtype)
    b2_pad = jnp.zeros((1, ATTR_PAD), jnp.float32).at[:, :D_INIT].set(b2)

    # --- Batch tiling (pad B to a sublane-friendly multiple of the tile) ---
    if B <= TILE_B_MAX:
        tile_b = _round_up(max(B, 8), 8)
        b_pad = tile_b
    else:
        tile_b = TILE_B_MAX
        b_pad = _round_up(B, TILE_B_MAX)
    z_pad = jnp.pad(z.astype(compute_dtype), ((0, b_pad - B), (0, 0)))

    dsize = jnp.dtype(compute_dtype).itemsize
    cost = pl.CostEstimate(
        flops=2 * b_pad * C_F * (N_FUSED + ATTR_PAD),
        transcendentals=0,
        bytes_accessed=(b_pad * C_F * dsize                    # z
                        + C_F * N_FUSED * dsize                # W_fused
                        + HIDDEN * ATTR_PAD * dsize            # W2_pad
                        + (HIDDEN + ATTR_PAD) * 4              # biases
                        + b_pad * 2 * ATTR_PAD * 4),           # packed output
    )

    packed = pl.pallas_call(
        _aai_kernel,
        out_shape=jax.ShapeDtypeStruct((b_pad, 2 * ATTR_PAD), jnp.float32),
        grid=(b_pad // tile_b,),
        in_specs=[
            pl.BlockSpec((tile_b, C_F), lambda i: (i, 0)),        # z tile (pipelined)
            pl.BlockSpec((C_F, N_FUSED), lambda i: (0, 0)),       # W_fused (resident)
            pl.BlockSpec((1, HIDDEN), lambda i: (0, 0)),          # b1 (resident)
            pl.BlockSpec((HIDDEN, ATTR_PAD), lambda i: (0, 0)),   # W2_pad (resident)
            pl.BlockSpec((1, ATTR_PAD), lambda i: (0, 0)),        # b2_pad (resident)
        ],
        out_specs=pl.BlockSpec((tile_b, 2 * ATTR_PAD), lambda i: (i, 0)),
        compiler_params=pltpu.CompilerParams(
            dimension_semantics=("parallel",)),
        cost_estimate=cost,
    )(z_pad, W_fused, b1, W2_pad, b2_pad)

    attr_logits = packed[:B, :D_TOTAL]
    init_logits = packed[:B, ATTR_PAD:ATTR_PAD + D_INIT]
    return attr_logits, init_logits


if __name__ == "__main__":
    key = jax.random.PRNGKey(0)
    k_z, k_poa, k_moa, k_asp, k_dev, k_w1, k_b1, k_w2, k_b2 = jax.random.split(key, 9)

    B = 2
    z = jax.random.normal(k_z, (B, C_F), dtype=jnp.float32)

    # Parameters (torch.randn-equivalent deterministic init).
    W_poa = jax.random.normal(k_poa, (C_F, D_POA), dtype=jnp.float32)
    W_moa = jax.random.normal(k_moa, (C_F, D_MOA), dtype=jnp.float32)
    W_asp = jax.random.normal(k_asp, (C_F, D_ASP), dtype=jnp.float32)
    W_dev = jax.random.normal(k_dev, (C_F, D_DEV), dtype=jnp.float32)
    W = jnp.concatenate([W_poa, W_moa, W_asp, W_dev], axis=1)        # [256, 15]
    A = _init_adjacency_matrix()                                     # [15, 15]

    W1 = 0.05 * jax.random.normal(k_w1, (C_F, HIDDEN), dtype=jnp.float32)
    b1 = 0.05 * jax.random.normal(k_b1, (1, HIDDEN), dtype=jnp.float32)
    W2 = 0.05 * jax.random.normal(k_w2, (HIDDEN, D_INIT), dtype=jnp.float32)
    b2 = 0.05 * jax.random.normal(k_b2, (1, D_INIT), dtype=jnp.float32)

    # ---- f32 compute path: matches the PyTorch module's f32 semantics ----
    attr_f32, init_f32 = aai_forward(z, W, A, W1, b1, W2, b2,
                                     compute_dtype=jnp.float32)
    jax.block_until_ready((attr_f32, init_f32))

    W_hat_ref = jnp.maximum(W @ A, 0.0)
    attr_ref = z @ W_hat_ref
    init_ref = jnp.maximum(z @ W1 + b1, 0.0) @ W2 + b2
    assert attr_f32.shape == (B, D_TOTAL) and init_f32.shape == (B, D_INIT)
    assert jnp.allclose(attr_f32, attr_ref, atol=1e-3, rtol=1e-3)
    assert jnp.allclose(init_f32, init_ref, atol=1e-3, rtol=1e-3)

    # ---- bf16 compute path (v6e/v7x MXU-peak path; f32 accumulation) ----
    attr_bf, init_bf = aai_forward(z, W, A, W1, b1, W2, b2,
                                   compute_dtype=jnp.bfloat16)
    jax.block_until_ready((attr_bf, init_bf))

    zb = z.astype(jnp.bfloat16)
    attr_ref_b = jnp.dot(zb, W_hat_ref.astype(jnp.bfloat16),
                         preferred_element_type=jnp.float32)
    h_b = jnp.maximum(jnp.dot(zb, W1.astype(jnp.bfloat16),
                              preferred_element_type=jnp.float32) + b1, 0.0)
    init_ref_b = jnp.dot(h_b.astype(jnp.bfloat16), W2.astype(jnp.bfloat16),
                         preferred_element_type=jnp.float32) + b2
    assert jnp.allclose(attr_bf, attr_ref_b, atol=2e-2, rtol=2e-2)
    assert jnp.allclose(init_bf, init_ref_b, atol=2e-2, rtol=2e-2)

    print("KERNEL_OK")
</pallas_src>

<mosaic_0001>
module attributes {stable_mosaic.version = 11 : i64} {
  func.func @_aai_kernel(%arg0: i32, %arg1: memref<8x256xf32, #tpu.memory_space<vmem>>, %arg2: memref<256x384xf32, #tpu.memory_space<vmem>>, %arg3: memref<1x256xf32, #tpu.memory_space<vmem>>, %arg4: memref<256x128xf32, #tpu.memory_space<vmem>>, %arg5: memref<1x128xf32, #tpu.memory_space<vmem>>, %arg6: memref<8x256xf32, #tpu.memory_space<vmem>>) attributes {dimension_semantics = [#tpu.dimension_semantics<parallel>], iteration_bounds = array<i64: 1>, scalar_prefetch = 0 : i64, scratch_operands = 0 : i64, tpu.core_type = #tpu.core_type<tc>, window_params = [{transform_indices = @transform_0, window_bounds = array<i64: 8, 256>}, {pipeline_mode = #tpu.pipeline_mode<synchronous>, transform_indices = @transform_1, window_bounds = array<i64: 256, 384>}, {pipeline_mode = #tpu.pipeline_mode<synchronous>, transform_indices = @transform_2, window_bounds = array<i64: 1, 256>}, {pipeline_mode = #tpu.pipeline_mode<synchronous>, transform_indices = @transform_3, window_bounds = array<i64: 256, 128>}, {pipeline_mode = #tpu.pipeline_mode<synchronous>, transform_indices = @transform_4, window_bounds = array<i64: 1, 128>}, {transform_indices = @transform_5, window_bounds = array<i64: 8, 256>}]} {
    %c0 = arith.constant 0 : index
    %c0_0 = arith.constant 0 : index
    %0 = vector.load %arg1[%c0, %c0_0] : memref<8x256xf32, #tpu.memory_space<vmem>>, vector<8x256xf32>
    %c0_1 = arith.constant 0 : index
    %c0_2 = arith.constant 0 : index
    %1 = vector.load %arg2[%c0_1, %c0_2] : memref<256x384xf32, #tpu.memory_space<vmem>>, vector<256x384xf32>
    %cst = arith.constant dense<0.000000e+00> : vector<8x384xf32>
    %2 = tpu.matmul %0, %1, %cst {dimension_numbers = #tpu.dot_dimension_numbers<[1], [0], [0], [1], [0, 0, 1, 1], [], []>} : vector<8x256xf32>, vector<256x384xf32>, vector<8x384xf32> -> vector<8x384xf32>
    %3 = vector.extract_strided_slice %2 {offsets = [0, 0], sizes = [8, 128], strides = [1, 1]} : vector<8x384xf32> to vector<8x128xf32>
    %4 = vector.extract_strided_slice %2 {offsets = [0, 128], sizes = [8, 256], strides = [1, 1]} : vector<8x384xf32> to vector<8x256xf32>
    %c0_3 = arith.constant 0 : index
    %c0_4 = arith.constant 0 : index
    %5 = vector.load %arg3[%c0_3, %c0_4] : memref<1x256xf32, #tpu.memory_space<vmem>>, vector<1x256xf32>
    %6 = vector.broadcast %5 : vector<1x256xf32> to vector<8x256xf32>
    %7 = arith.addf %4, %6 : vector<8x256xf32>
    %cst_5 = arith.constant 0.000000e+00 : f32
    %8 = vector.broadcast %cst_5 : f32 to vector<8x256xf32>
    %9 = arith.maximumf %7, %8 : vector<8x256xf32>
    %c0_6 = arith.constant 0 : index
    %c0_7 = arith.constant 0 : index
    %10 = vector.load %arg4[%c0_6, %c0_7] : memref<256x128xf32, #tpu.memory_space<vmem>>, vector<256x128xf32>
    %cst_8 = arith.constant dense<0.000000e+00> : vector<8x128xf32>
    %11 = tpu.matmul %9, %10, %cst_8 {dimension_numbers = #tpu.dot_dimension_numbers<[1], [0], [0], [1], [0, 0, 1, 1], [], []>} : vector<8x256xf32>, vector<256x128xf32>, vector<8x128xf32> -> vector<8x128xf32>
    %c0_9 = arith.constant 0 : index
    %c0_10 = arith.constant 0 : index
    %12 = vector.load %arg5[%c0_9, %c0_10] : memref<1x128xf32, #tpu.memory_space<vmem>>, vector<1x128xf32>
    %13 = vector.broadcast %12 : vector<1x128xf32> to vector<8x128xf32>
    %14 = arith.addf %11, %13 : vector<8x128xf32>
    %c0_11 = arith.constant 0 : index
    %c0_12 = arith.constant 0 : index
    %15 = vector.load %arg6[%c0_11, %c0_12] : memref<8x256xf32, #tpu.memory_space<vmem>>, vector<8x128xf32>
    tpu.vector_store %arg6[%c0_11, %c0_12], %3 {strides = array<i32>} : memref<8x256xf32, #tpu.memory_space<vmem>>, vector<8x128xf32>,
    %c0_13 = arith.constant 0 : index
    %c128 = arith.constant 128 : index
    %16 = vector.load %arg6[%c0_13, %c128] : memref<8x256xf32, #tpu.memory_space<vmem>>, vector<8x128xf32>
    tpu.vector_store %arg6[%c0_13, %c128], %14 {strides = array<i32>} : memref<8x256xf32, #tpu.memory_space<vmem>>, vector<8x128xf32>,
    return
  }
  func.func @transform_0(%arg0: i32) -> (i32, i32) {
    %c0_i32 = arith.constant 0 : i32
    %c0_i32_0 = arith.constant 0 : i32
    return %arg0, %c0_i32 : i32, i32
  }
  func.func @transform_1(%arg0: i32) -> (i32, i32) {
    %c0_i32 = arith.constant 0 : i32
    %c0_i32_0 = arith.constant 0 : i32
    %c0_i32_1 = arith.constant 0 : i32
    return %c0_i32, %c0_i32_0 : i32, i32
  }
  func.func @transform_2(%arg0: i32) -> (i32, i32) {
    %c0_i32 = arith.constant 0 : i32
    %c0_i32_0 = arith.constant 0 : i32
    %c0_i32_1 = arith.constant 0 : i32
    return %c0_i32, %c0_i32_0 : i32, i32
  }
  func.func @transform_3(%arg0: i32) -> (i32, i32) {
    %c0_i32 = arith.constant 0 : i32
    %c0_i32_0 = arith.constant 0 : i32
    %c0_i32_1 = arith.constant 0 : i32
    return %c0_i32, %c0_i32_0 : i32, i32
  }
  func.func @transform_4(%arg0: i32) -> (i32, i32) {
    %c0_i32 = arith.constant 0 : i32
    %c0_i32_0 = arith.constant 0 : i32
    %c0_i32_1 = arith.constant 0 : i32
    return %c0_i32, %c0_i32_0 : i32, i32
  }
  func.func @transform_5(%arg0: i32) -> (i32, i32) {
    %c0_i32 = arith.constant 0 : i32
    %c0_i32_0 = arith.constant 0 : i32
    return %arg0, %c0_i32 : i32, i32
  }
}

</mosaic_0001>

<bundles_post_ra>
// kernel: aai_forward.1
= control target key start
LH: loop header
LB: loop body
LE: loop exit
PB: predicated region body
PF: predicated region fallthrough
CT: control target
= control target key end

     0   :  { %s897_s1 = inlined_call_operand.vmem [shape: f32[256,384], index: 1, kind: input, shape index: {}]   ;;  %s898_s0 = inlined_call_operand.vmem [shape: f32[8,256], index: 0, kind: input, shape index: {}]   ;;  %s899_s3 = inlined_call_operand.vmem [shape: f32[256,128], index: 3, kind: input, shape index: {}]   ;;  %s900_s2 = inlined_call_operand.vmem [shape: f32[1,256], index: 2, kind: input, shape index: {}]   ;;  %s901_s5 = inlined_call_operand.vmem [shape: f32[8,256], index: 5, kind: output, shape index: {}]   ;;  %s902_s4 = inlined_call_operand.vmem [shape: f32[1,128], index: 4, kind: input, shape index: {}]  }
   0x1   :  { %v68_v0 = vld [vmem:[%s897_s1 + $0x170] sm:$0xff]  ;;  %v67_v1 = vld [vmem:[%s897_s1 + $0x168] sm:$0xff]  ;;  %v65_v2 = vld [vmem:[%s897_s1 + $0x158] sm:$0xff] }
   0x2   :  { %118 = vmatprep.subr.mxu0 %v68_v0  ;;  %v64_v3 = vld [vmem:[%s897_s1 + $0x150] sm:$0xff]  ;;  %v62_v4 = vld [vmem:[%s897_s1 + $0x140] sm:$0xff]  ;;  %v61_v5 = vld [vmem:[%s897_s1 + $0x138] sm:$0xff] }
   0x3   :  { %119 = vmatpush1.msra.mxu0 %v67_v1  ;;  %v59_v6 = vld [vmem:[%s897_s1 + $0x128] sm:$0xff]  ;;  %v58_v7 = vld [vmem:[%s897_s1 + $0x120] sm:$0xff]  ;;  %v56_v8 = vld [vmem:[%s897_s1 + $0x110] sm:$0xff] }
   0x4   :  { %120 = vmatprep.subr.mxu0 %v65_v2  ;;  %v55_v9 = vld [vmem:[%s897_s1 + $0x108] sm:$0xff]  ;;  %v53_v10 = vld [vmem:[%s897_s1 + $0xf8] sm:$0xff]  ;;  %v52_v11 = vld [vmem:[%s897_s1 + $0xf0] sm:$0xff] }
   0x5   :  { %121 = vmatpush1.msra.mxu0 %v64_v3  ;;  %v117_v12 = vld [vmem:[%s897_s1 + $0x2f8] sm:$0xff]  ;;  %v50_v13 = vld [vmem:[%s897_s1 + $0xe0] sm:$0xff]  ;;  %v47_v18 = vld [vmem:[%s897_s1 + $0xc8] sm:$0xff] }
   0x6   :  { %122 = vmatprep.subr.mxu0 %v62_v4  ;;  %391 = vmatprep.subr.mxu1 %v117_v12  ;;  %v69_v14 = vld [vmem:[%s897_s1 + $0x178] sm:$0xff]  ;;  %v114_v15 = vld [vmem:[%s897_s1 + $0x2e0] sm:$0xff]  ;;  %v111_v19 = vld [vmem:[%s897_s1 + $0x2c8] sm:$0xff] }
   0x7   :  { %123 = vmatpush1.msra.mxu0 %v61_v5  ;;  %v49_v16 = vld [vmem:[%s897_s1 + $0xd8] sm:$0xff]  ;;  %392 = vmatpush3.msra.mxu1 %v69_v14  ;;  %v66_v17 = vld [vmem:[%s897_s1 + $0x160] sm:$0xff]  ;;  %v63_v20 = vld [vmem:[%s897_s1 + $0x148] sm:$0xff] }
   0x8   :  { %124 = vmatprep.subr.mxu0 %v59_v6  ;;  %393 = vmatprep.subr.mxu1 %v114_v15  ;;  %v46_v21 = vld [vmem:[%s897_s1 + $0xc0] sm:$0xff]  ;;  %v108_v22 = vld [vmem:[%s897_s1 + $0x2b0] sm:$0xff]  ;;  %v43_v25 = vld [vmem:[%s897_s1 + $0xa8] sm:$0xff] }
   0x9   :  { %125 = vmatpush1.msra.mxu0 %v58_v7  ;;  %394 = vmatpush3.msra.mxu1 %v66_v17  ;;  %v44_v23 = vld [vmem:[%s897_s1 + $0xb0] sm:$0xff]  ;;  %v105_v26 = vld [vmem:[%s897_s1 + $0x298] sm:$0xff]  ;;  %v102_v30 = vld [vmem:[%s897_s1 + $0x280] sm:$0xff] }
   0xa   :  { %126 = vmatprep.subr.mxu0 %v56_v8  ;;  %395 = vmatprep.subr.mxu1 %v111_v19  ;;  %v60_v24 = vld [vmem:[%s897_s1 + $0x130] sm:$0xff]  ;;  %v41_v27 = vld [vmem:[%s897_s1 + $0x98] sm:$0xff]  ;;  %v38_v31 = vld [vmem:[%s897_s1 + $0x80] sm:$0xff] }
   0xb   :  { %127 = vmatpush1.msra.mxu0 %v55_v9  ;;  %396 = vmatpush3.msra.mxu1 %v63_v20  ;;  %v57_v28 = vld [vmem:[%s897_s1 + $0x118] sm:$0xff]  ;;  %v40_v29 = vld [vmem:[%s897_s1 + $0x90] sm:$0xff]  ;;  %v54_v32 = vld [vmem:[%s897_s1 + $0x100] sm:$0xff] }
   0xc   :  { %128 = vmatprep.subr.mxu0 %v53_v10  ;;  %397 = vmatprep.subr.mxu1 %v108_v22  ;;  %v37_v33 = vld [vmem:[%s897_s1 + $0x78] sm:$0xff]  ;;  %v99_v34 = vld [vmem:[%s897_s1 + $0x268] sm:$0xff]  ;;  %v34_v37 = vld [vmem:[%s897_s1 + $0x60] sm:$0xff] }
   0xd   :  { %129 = vmatpush1.msra.mxu0 %v52_v11  ;;  %398 = vmatpush3.msra.mxu1 %v60_v24  ;;  %v35_v35 = vld [vmem:[%s897_s1 + $0x68] sm:$0xff]  ;;  %v96_v38 = vld [vmem:[%s897_s1 + $0x250] sm:$0xff]  ;;  %v93_v42 = vld [vmem:[%s897_s1 + $0x238] sm:$0xff] }
   0xe   :  { %130 = vmatprep.subr.mxu0 %v50_v13  ;;  %399 = vmatprep.subr.mxu1 %v105_v26  ;;  %v51_v36 = vld [vmem:[%s897_s1 + $0xe8] sm:$0xff]  ;;  %v32_v39 = vld [vmem:[%s897_s1 + $0x50] sm:$0xff]  ;;  %v29_v43 = vld [vmem:[%s897_s1 + $0x38] sm:$0xff] }
   0xf   :  { %131 = vmatpush1.msra.mxu0 %v49_v16  ;;  %400 = vmatpush3.msra.mxu1 %v57_v28  ;;  %v48_v40 = vld [vmem:[%s897_s1 + $0xd0] sm:$0xff]  ;;  %v31_v41 = vld [vmem:[%s897_s1 + $0x48] sm:$0xff]  ;;  %v45_v44 = vld [vmem:[%s897_s1 + $0xb8] sm:$0xff] }
  0x10   :  { %132 = vmatprep.subr.mxu0 %v47_v18  ;;  %401 = vmatprep.subr.mxu1 %v102_v30  ;;  %v28_v45 = vld [vmem:[%s897_s1 + $0x30] sm:$0xff]  ;;  %v90_v46 = vld [vmem:[%s897_s1 + $0x220] sm:$0xff]  ;;  %v25_v49 = vld [vmem:[%s897_s1 + $0x18] sm:$0xff] }
  0x11   :  { %133 = vmatpush1.msra.mxu0 %v46_v21  ;;  %402 = vmatpush3.msra.mxu1 %v54_v32  ;;  %v26_v47 = vld [vmem:[%s897_s1 + $0x20] sm:$0xff]  ;;  %v87_v50 = vld [vmem:[%s897_s1 + $0x208] sm:$0xff]  ;;  %v84_v54 = vld [vmem:[%s897_s1 + $0x1f0] sm:$0xff] }
  0x12   :  { %134 = vmatprep.subr.mxu0 %v44_v23  ;;  %403 = vmatprep.subr.mxu1 %v99_v34  ;;  %v42_v48 = vld [vmem:[%s897_s1 + $0xa0] sm:$0xff]  ;;  %v23_v51 = vld [vmem:[%s897_s1 + $0x8] sm:$0xff]  ;;  %v116_v55 = vld [vmem:[%s897_s1 + $0x2f0] sm:$0xff] }
  0x13   :  { %135 = vmatpush1.msra.mxu0 %v43_v25  ;;  %404 = vmatpush3.msra.mxu1 %v51_v36  ;;  %v39_v52 = vld [vmem:[%s897_s1 + $0x88] sm:$0xff]  ;;  %v22_v53 = vld [vmem:[%s897_s1] sm:$0xff]  ;;  %v36_v56 = vld [vmem:[%s897_s1 + $0x70] sm:$0xff] }
  0x14   :  { %136 = vmatprep.subr.mxu0 %v41_v27  ;;  %405 = vmatprep.subr.mxu1 %v96_v38  ;;  %v115_v57 = vld [vmem:[%s897_s1 + $0x2e8] sm:$0xff]  ;;  %v81_v58 = vld [vmem:[%s897_s1 + $0x1d8] sm:$0xff]  ;;  %v112_v61 = vld [vmem:[%s897_s1 + $0x2d0] sm:$0xff] }
  0x15   :  { %137 = vmatpush1.msra.mxu0 %v40_v29  ;;  %406 = vmatpush3.msra.mxu1 %v48_v40  ;;  %v113_v59 = vld [vmem:[%s897_s1 + $0x2d8] sm:$0xff]  ;;  %v78_v62 = vld [vmem:[%s897_s1 + $0x1c0] sm:$0xff]  ;;  %v75_v2 = vld [vmem:[%s897_s1 + $0x1a8] sm:$0xff] }
  0x16   :  { %138 = vmatprep.subr.mxu0 %v38_v31  ;;  %407 = vmatprep.subr.mxu1 %v93_v42  ;;  %v33_v60 = vld [vmem:[%s897_s1 + $0x58] sm:$0xff]  ;;  %v110_v63 = vld [vmem:[%s897_s1 + $0x2c0] sm:$0xff]  ;;  %v107_v3 = vld [vmem:[%s897_s1 + $0x2a8] sm:$0xff] }
  0x17   :  { %139 = vmatpush1.msra.mxu0 %v37_v33  ;;  %408 = vmatpush3.msra.mxu1 %v45_v44  ;;  %v30_v0 = vld [vmem:[%s897_s1 + $0x40] sm:$0xff]  ;;  %v109_v1 = vld [vmem:[%s897_s1 + $0x2b8] sm:$0xff]  ;;  %v27_v4 = vld [vmem:[%s897_s1 + $0x28] sm:$0xff] }
  0x18   :  { %140 = vmatprep.subr.mxu0 %v35_v35  ;;  %409 = vmatprep.subr.mxu1 %v90_v46  ;;  %v106_v5 = vld [vmem:[%s897_s1 + $0x2a0] sm:$0xff]  ;;  %v72_v6 = vld [vmem:[%s897_s1 + $0x190] sm:$0xff]  ;;  %v103_v9 = vld [vmem:[%s897_s1 + $0x288] sm:$0xff] }
  0x19   :  { %141 = vmatpush1.msra.mxu0 %v34_v37  ;;  %410 = vmatpush3.msra.mxu1 %v42_v48  ;;  %v104_v7 = vld [vmem:[%s897_s1 + $0x290] sm:$0xff]  ;;  %v21_v10 = vld [vmem:[%s898_s0 + $0x8] sm:$0xff]  ;;  %v101_v11 = vld [vmem:[%s897_s1 + $0x278] sm:$0xff] }
  0x1a   :  { %142 = vmatprep.subr.mxu0 %v32_v39  ;;  %411 = vmatprep.subr.mxu1 %v87_v50  ;;  %v24_v8 = vld [vmem:[%s897_s1 + $0x10] sm:$0xff]  ;;  %v722_v12 = vld [vmem:[%s898_s0] sm:$0xff]  ;;  %v306_v15 = vld [vmem:[%s899_s3 + $0xf8] sm:$0xff] }
  0x1b   :  { %143 = vmatpush1.msra.mxu0 %v31_v41  ;;  %412 = vmatpush3.msra.mxu1 %v39_v52  ;;  %v100_v13 = vld [vmem:[%s897_s1 + $0x270] sm:$0xff]  ;;  %v98_v14 = vld [vmem:[%s897_s1 + $0x260] sm:$0xff]  ;;  %v97_v16 = vld [vmem:[%s897_s1 + $0x258] sm:$0xff] }
  0x1c   :  { %144 = vmatprep.subr.mxu0 %v29_v43  ;;  %413 = vmatprep.subr.mxu1 %v84_v54  ;;  %v290_v17 = vld [vmem:[%s899_s3 + $0x78] sm:$0xff]  ;;  %v95_v18 = vld [vmem:[%s897_s1 + $0x248] sm:$0xff]  ;;  %v305_v19 = vld [vmem:[%s899_s3 + $0xf0] sm:$0xff] }
  0x1d   :  { %145 = vmatpush1.msra.mxu0 %v28_v45  ;;  %414 = vmatpush3.msra.mxu1 %v36_v56  ;;  %v94_v20 = vld [vmem:[%s897_s1 + $0x240] sm:$0xff]  ;;  %v289_v21 = vld [vmem:[%s899_s3 + $0x70] sm:$0xff]  ;;  %v304_v23 = vld [vmem:[%s899_s3 + $0xe8] sm:$0xff] }
  0x1e   :  { %146 = vmatprep.subr.mxu0 %v26_v47  ;;  %415 = vmatprep.subr.mxu1 %v81_v58  ;;  %v92_v22 = vld [vmem:[%s897_s1 + $0x230] sm:$0xff]  ;;  %v91_v24 = vld [vmem:[%s897_s1 + $0x228] sm:$0xff]  ;;  %v89_v26 = vld [vmem:[%s897_s1 + $0x218] sm:$0xff] }
  0x1f   :  { %147 = vmatpush1.msra.mxu0 %v25_v49  ;;  %416 = vmatpush3.msra.mxu1 %v33_v60  ;;  %v288_v25 = vld [vmem:[%s899_s3 + $0x68] sm:$0xff]  ;;  %v303_v27 = vld [vmem:[%s899_s3 + $0xe0] sm:$0xff]  ;;  %v88_v28 = vld [vmem:[%s897_s1 + $0x210] sm:$0xff] }
  0x20   :  { %148 = vmatprep.subr.mxu0 %v23_v51  ;;  %417 = vmatprep.subr.mxu1 %v78_v62  ;;  %v287_v29 = vld [vmem:[%s899_s3 + $0x60] sm:$0xff]  ;;  %v302_v31 = vld [vmem:[%s899_s3 + $0xd8] sm:$0xff]  ;;  %v83_v34 = vld [vmem:[%s897_s1 + $0x1e8] sm:$0xff] }
  0x21   :  { %149 = vmatpush1.msra.mxu0 %v22_v53  ;;  %418 = vmatpush3.msra.mxu1 %v30_v0  ;;  %v86_v30 = vld [vmem:[%s897_s1 + $0x200] sm:$0xff]  ;;  %v85_v32 = vld [vmem:[%s897_s1 + $0x1f8] sm:$0xff]  ;;  %v301_v35 = vld [vmem:[%s899_s3 + $0xd0] sm:$0xff] }
  0x22   :  { %150 = vmatprep.subr.mxu0 %v116_v55  ;;  %419 = vmatprep.subr.mxu1 %v75_v2  ;;  %v286_v33 = vld [vmem:[%s899_s3 + $0x58] sm:$0xff]  ;;  %v82_v36 = vld [vmem:[%s897_s1 + $0x1e0] sm:$0xff]  ;;  %v285_v37 = vld [vmem:[%s899_s3 + $0x50] sm:$0xff]  ;;  %v261_v2 = vlaneseq }
  0x23   :  { %151 = vmatpush2.msra.mxu0 %v115_v57  ;;  %420 = vmatpush3.msra.mxu1 %v27_v4  ;;  %v80_v38 = vld [vmem:[%s897_s1 + $0x1d0] sm:$0xff]  ;;  %v300_v39 = vld [vmem:[%s899_s3 + $0xc8] sm:$0xff]  ;;  %v77_v42 = vld [vmem:[%s897_s1 + $0x1b8] sm:$0xff] }
  0x24   :  { %152 = vmatprep.subr.mxu0 %v113_v59  ;;  %421 = vmatprep.subr.mxu1 %v72_v6  ;;  %v79_v40 = vld [vmem:[%s897_s1 + $0x1c8] sm:$0xff]  ;;  %v299_v43 = vld [vmem:[%s899_s3 + $0xc0] sm:$0xff]  ;;  %v76_v44 = vld [vmem:[%s897_s1 + $0x1b0] sm:$0xff] }
  0x25   :  { %153 = vmatpush2.msra.mxu0 %v112_v61  ;;  %422 = vmatpush3.msra.mxu1 %v24_v8  ;;  %v284_v41 = vld [vmem:[%s899_s3 + $0x48] sm:$0xff]  ;;  %v283_v45 = vld [vmem:[%s899_s3 + $0x40] sm:$0xff]  ;;  %v298_v47 = vld [vmem:[%s899_s3 + $0xb8] sm:$0xff] }
  0x26   :  { %154 = vmatprep.subr.mxu0 %v110_v63  ;;  %253 = vmatprep.mubr.f32.mxu1 %v21_v10  ;;  %v74_v46 = vld [vmem:[%s897_s1 + $0x1a0] sm:$0xff]  ;;  %v73_v48 = vld [vmem:[%s897_s1 + $0x198] sm:$0xff]  ;;  %v71_v50 = vld [vmem:[%s897_s1 + $0x188] sm:$0xff] }
  0x27   :  { %155 = vmatpush2.msra.mxu0 %v109_v1  ;;  %254 = vmatmul.mubr.f32.vlgmr.msra.gmra.mxu1 %v722_v12  ;;  %v282_v49 = vld [vmem:[%s899_s3 + $0x38] sm:$0xff]  ;;  %v297_v51 = vld [vmem:[%s899_s3 + $0xb0] sm:$0xff]  ;;  %v70_v52 = vld [vmem:[%s897_s1 + $0x180] sm:$0xff] }
  0x28   :  { %156 = vmatprep.subr.mxu0 %v107_v3  ;;  %182 = vmatprep.mubr.f32.mxu0 %v21_v10  ;;  %v281_v53 = vld [vmem:[%s899_s3 + $0x30] sm:$0xff]  ;;  %v296_v54 = vld [vmem:[%s899_s3 + $0xa8] sm:$0xff]  ;;  %v295_v56 = vld [vmem:[%s899_s3 + $0xa0] sm:$0xff]  ;;  %v262_v3 = vshrl.u32 %v261_v2, 7 }
  0x29   :  { %157 = vmatpush2.msra.mxu0 %v106_v5  ;;  %426 = vmatprep.subr.mxu1 %v306_v15  ;;  %v280_v55 = vld [vmem:[%s899_s3 + $0x28] sm:$0xff]  ;;  %v279_v57 = vld [vmem:[%s899_s3 + $0x20] sm:$0xff]  ;;  %v294_v58 = vld [vmem:[%s899_s3 + $0x98] sm:$0xff] }
  0x2a   :  { %158 = vmatprep.subr.mxu0 %v104_v7  ;;  %427 = vmatpush3.msra.mxu1 %v290_v17  ;;  %v278_v59 = vld [vmem:[%s899_s3 + $0x18] sm:$0xff]  ;;  %v293_v60 = vld [vmem:[%s899_s3 + $0x90] sm:$0xff]  ;;  %v292_v62 = vld [vmem:[%s899_s3 + $0x88] sm:$0xff]  ;;  %v267_v4 = vsub.s32 1, %v262_v3 }
  0x2b   :  { %159 = vmatpush2.msra.mxu0 %v103_v9  ;;  %428 = vmatprep.subr.mxu1 %v305_v19  ;;  %v277_v61 = vld [vmem:[%s899_s3 + $0x10] sm:$0xff]  ;;  %v276_v63 = vld [vmem:[%s899_s3 + $0x8] sm:$0xff]  ;;  %v291_v0 = vld [vmem:[%s899_s3 + $0x80] sm:$0xff] }
  0x2c   :  { %160 = vmatprep.subr.mxu0 %v101_v11  ;;  %429 = vmatpush3.msra.mxu1 %v289_v21  ;;  %v275_v1 = vld [vmem:[%s899_s3] sm:$0xff] }
  0x2d   :  { %161 = vmatpush2.msra.mxu0 %v100_v13  ;;  %430 = vmatprep.subr.mxu1 %v304_v23  ;;  %v259_v5 = vld [vmem:[%s900_s2] sm:$0x3] }
  0x2e   :  { %162 = vmatprep.subr.mxu0 %v98_v14  ;;  %431 = vmatpush3.msra.mxu1 %v288_v25  ;;  %v268_v7 = vrot.slane %v259_v5, %v267_v4  ;;  %v390_v19 = vld [vmem:[%s902_s4] ss:$0 sm:$0xff] }
  0x2f   :  { %163 = vmatpush2.msra.mxu0 %v97_v16  ;;  %432 = vmatprep.subr.mxu1 %v303_v27 }
  0x30   :  { %164 = vmatprep.subr.mxu0 %v95_v18  ;;  %433 = vmatpush3.msra.mxu1 %v287_v29 }
  0x31   :  { %165 = vmatpush2.msra.mxu0 %v94_v20  ;;  %434 = vmatprep.subr.mxu1 %v302_v31 }
  0x32   :  { %166 = vmatprep.subr.mxu0 %v92_v22  ;;  %435 = vmatpush3.msra.mxu1 %v286_v33 }
  0x33   :  { %167 = vmatpush2.msra.mxu0 %v91_v24  ;;  %436 = vmatprep.subr.mxu1 %v301_v35 }
  0x34   :  { %168 = vmatprep.subr.mxu0 %v89_v26  ;;  %437 = vmatpush3.msra.mxu1 %v285_v37 }
  0x35   :  { %169 = vmatpush2.msra.mxu0 %v88_v28  ;;  %438 = vmatprep.subr.mxu1 %v300_v39 }
  0x36   :  { %170 = vmatprep.subr.mxu0 %v86_v30  ;;  %439 = vmatpush3.msra.mxu1 %v284_v41 }
  0x37   :  { %171 = vmatpush2.msra.mxu0 %v85_v32  ;;  %440 = vmatprep.subr.mxu1 %v299_v43 }
  0x38   :  { %172 = vmatprep.subr.mxu0 %v83_v34  ;;  %441 = vmatpush3.msra.mxu1 %v283_v45 }
  0x39   :  { %173 = vmatpush2.msra.mxu0 %v82_v36  ;;  %442 = vmatprep.subr.mxu1 %v298_v47 }
  0x3a   :  { %174 = vmatprep.subr.mxu0 %v80_v38  ;;  %443 = vmatpush3.msra.mxu1 %v282_v49 }
  0x3b   :  { %175 = vmatpush2.msra.mxu0 %v79_v40  ;;  %444 = vmatprep.subr.mxu1 %v297_v51 }
  0x3c   :  { %176 = vmatprep.subr.mxu0 %v77_v42  ;;  %445 = vmatpush3.msra.mxu1 %v281_v53 }
  0x3d   :  { %177 = vmatpush2.msra.mxu0 %v76_v44  ;;  %446 = vmatprep.subr.mxu1 %v296_v54 }
  0x3e   :  { %178 = vmatprep.subr.mxu0 %v74_v46  ;;  %447 = vmatpush3.msra.mxu1 %v280_v55 }
  0x3f   :  { %179 = vmatpush2.msra.mxu0 %v73_v48  ;;  %448 = vmatprep.subr.mxu1 %v295_v56 }
  0x40   :  { %180 = vmatprep.subr.mxu0 %v71_v50  ;;  %449 = vmatpush3.msra.mxu1 %v279_v57 }
  0x41   :  { %181 = vmatpush2.msra.mxu0 %v70_v52  ;;  %450 = vmatprep.subr.mxu1 %v294_v58 }
  0x42   :  { %183 = vmatmul.mubr.f32.vlgmr.msra.gmra.mxu0 %v722_v12  ;;  %451 = vmatpush3.msra.mxu1 %v278_v59  ;;  %v263_v12 = vsub.s32 0, %v262_v3 }
  0x43   :  { %452 = vmatprep.subr.mxu1 %v293_v60 }
  0x44   :  { %453 = vmatpush3.msra.mxu1 %v277_v61  ;;  %v264_v13 = vrot.slane %v259_v5, %v263_v12 }
  0x45   :  { %454 = vmatprep.subr.mxu1 %v292_v62 }
  0x46   :  { %455 = vmatpush3.msra.mxu1 %v276_v63 }
  0x47   :  { %456 = vmatprep.subr.mxu1 %v291_v0 }
  0x48   :  { %457 = vmatpush3.msra.mxu1 %v275_v1 }
  0xe7   :  { %v423_v6 = vpop.f32.mrf.mxu1 }
  0xe9   :  { %v424_v8 = vpop.f32.mrf.mxu1 }
  0xea   :  { %v425_v9 = vadd.f32 %v424_v8, %v423_v6 }
  0xec   :  { %v272_v10 = vadd.f32 %v425_v9, %v268_v7 }
  0xee   :  { %v274_v11 = vmax.f32 %v272_v10, 0.0 }
  0xf0   :  { %378 = vmatprep.mubr.f32.mxu1 %v274_v11 }
 0x102   :  { %v184_v14 = vpop.f32.mrf.mxu0 }
 0x103   :  { %384 = vst [vmem:[%s901_s5] sm:$0xff] %v184_v14 }
 0x104   :  { %v186_v15 = vpop.f32.mrf.mxu0 }
 0x105   :  { %v271_v16 = vadd.f32 %v264_v13, %v186_v15 }
 0x107   :  { %v273_v17 = vmax.f32 %v271_v16, 0.0 }
 0x109   :  { %379 = vmatmul.mubr.f32.vlgmr.msra.gmra.mxu1 %v273_v17 }
 0x1c9   :  { %v458_v18 = vpop.f32.mrf.mxu1 }
 0x1cb   :  { %v459_v20 = vpop.f32.mrf.mxu1 }
 0x1cc   :  { %v460_v21 = vadd.f32 %v459_v20, %v458_v18 }
 0x1ce   :  { %v381_v22 = vadd.f32 %v460_v21, %v390_v19 }
 0x1d0   :  { %385 = vst [vmem:[%s901_s5 + $0x8] sm:$0xff] %v381_v22 }

</bundles_post_ra>
